<compile_context>
chip_gen: v7x
topology: tpu7x:2x2x1
jax: 0.10.0
libtpu: 0.0.40
codegen_flags: <defaults>
</compile_context>

<pallas_src>
import math
import jax
import jax.numpy as jnp
from jax.experimental import pallas as pl
from jax.experimental.pallas import tpu as pltpu

BN_EPS = 1e-5


def _matmul_bias_kernel(h_ref, w_ref, b_ref, o_ref):
    """One grid step computes a (B, TILE_C) slab of the output.

    h_ref : (B, D)       bf16, BN + ReLU already applied (resident every step)
    w_ref : (D, TILE_C)  bf16 block-contiguous weight slab
    b_ref : (1, TILE_C)  f32 bias slab
    o_ref : (B, TILE_C)  f32 output slab
    """
    o_ref[...] = (
        jnp.dot(h_ref[...], w_ref[...], preferred_element_type=jnp.float32)
        + b_ref[...]
    )


def _round_up(x, m):
    return (x + m - 1) // m * m


def _physical_vmem_bytes():
    try:
        return int(pltpu.get_tpu_info().vmem_capacity_bytes)
    except Exception:
        return 64 << 20  # conservative fallback (v7x per-TC physical VMEM)


def _pick_tile_c(D, C):
    """Largest class tile (multiple of 256, >=128) whose double-buffered bf16
    weight slabs stay under ~1/4 of physical VMEM (re-derived per generation:
    v7x 64 MiB, v5e/v6e 128 MiB)."""
    w_budget = _physical_vmem_bytes() // 4
    tile_c = 2048
    while tile_c > 256 and 2 * D * tile_c * 2 > w_budget:
        tile_c //= 2
    # No point tiling wider than the (padded) class count.
    tile_c = min(tile_c, _round_up(C, 256))
    return max(128, tile_c)


def _vmem_limit_bytes(B, D, tile_c):
    bf16, f32 = 2, 4
    total = (
        2 * B * D * bf16          # resident bf16 activations (worst-case 2 bufs)
        + 2 * D * tile_c * bf16   # weight slabs, double-buffered
        + 2 * tile_c * f32        # bias slab
        + 2 * B * tile_c * f32    # output slab
    )
    budget = int(total * 1.5) + (4 << 20)   # headroom for compiler scratch
    return min(budget, int(_physical_vmem_bytes() * 0.9))


def linear_loss_forward(cosine, label, gamma, beta, weight_t, bias, *, tile_c=None):
    """Pallas forward for the `Linear` margin-loss head.

    cosine   : (B, D) float32
    label    : ignored (kept for API parity with the PyTorch module)
    gamma    : (D,)   BN weight
    beta     : (D,)   BN bias
    weight_t : (D, C) Linear weight, already transposed
    bias     : (C,)   Linear bias
    returns  : (B, C) float32
    """
    del label
    B, D = cosine.shape
    D2, C = weight_t.shape
    assert D == D2

    x = cosine.astype(jnp.float32)

    # --- BatchNorm1d stats (training mode, biased variance) + affine + ReLU,
    # computed ONCE in pure JAX (O(B*D), negligible next to the O(D*C) stream).
    mean = jnp.mean(x, axis=0, keepdims=True)                       # (1, D)
    var = jnp.mean(jnp.square(x - mean), axis=0, keepdims=True)     # (1, D)
    inv_std = jax.lax.rsqrt(var + BN_EPS)
    scale = gamma.reshape(1, D).astype(jnp.float32) * inv_std       # (1, D)
    shift = beta.reshape(1, D).astype(jnp.float32) - mean * scale   # (1, D)
    h = jnp.maximum(x * scale + shift, 0.0).astype(jnp.bfloat16)    # (B, D) bf16

    # --- Class-tile sizing (VMEM-aware per generation) + padding so any
    # class_num works with the perf-optimal tile width.
    if tile_c is None:
        tile_c = _pick_tile_c(D, C)
    n_tiles = pl.cdiv(C, tile_c)
    C_pad = n_tiles * tile_c

    # --- One-time param prep (lives at model-load time in a real head):
    # block-contiguous bf16 weight slabs (n_tiles, D, tile_c) -> each grid step
    # is one dense DMA instead of D strided short rows.  Padded columns get
    # zero weight / zero bias and are sliced off below.
    w_pad = jnp.pad(weight_t.astype(jnp.bfloat16), ((0, 0), (0, C_pad - C)))
    w_blocked = w_pad.reshape(D, n_tiles, tile_c).transpose(1, 0, 2)
    bias_pad = jnp.pad(bias.astype(jnp.float32), (0, C_pad - C)).reshape(1, C_pad)

    out_pad = pl.pallas_call(
        _matmul_bias_kernel,
        out_shape=jax.ShapeDtypeStruct((B, C_pad), jnp.float32),
        grid_spec=pltpu.PrefetchScalarGridSpec(
            num_scalar_prefetch=0,
            grid=(n_tiles,),
            in_specs=[
                pl.BlockSpec((B, D), lambda j: (0, 0)),                # h (resident)
                pl.BlockSpec((None, D, tile_c), lambda j: (j, 0, 0)),  # W slab (bf16)
                pl.BlockSpec((1, tile_c), lambda j: (0, j)),           # bias slab
            ],
            out_specs=pl.BlockSpec((B, tile_c), lambda j: (0, j)),
        ),
        compiler_params=pltpu.CompilerParams(
            dimension_semantics=("parallel",),   # class axis shards across TCs
            vmem_limit_bytes=_vmem_limit_bytes(B, D, tile_c),
        ),
    )(h, w_blocked, bias_pad)

    return out_pad[:, :C]


def _reference_forward(cosine, gamma, beta, weight_t, bias, *, bf16_path):
    """Pure-JAX reference mirroring PyTorch BatchNorm1d(train) -> ReLU -> Linear."""
    x = cosine.astype(jnp.float32)
    mean = jnp.mean(x, axis=0, keepdims=True)
    var = jnp.mean((x - mean) ** 2, axis=0, keepdims=True)
    xn = (x - mean) / jnp.sqrt(var + BN_EPS) * gamma[None, :] + beta[None, :]
    h = jnp.maximum(xn, 0.0)
    if bf16_path:
        out = jnp.dot(h.astype(jnp.bfloat16), weight_t.astype(jnp.bfloat16),
                      preferred_element_type=jnp.float32)
    else:
        out = h @ weight_t
    return out + bias[None, :]


if __name__ == "__main__":
    # Small shapes consistent with the module (emb_dim=512, class_num=1000
    # scaled down); class_num is intentionally NOT a multiple of the tile so
    # the padding path is exercised (tile_c=512 -> C_pad=1024, grid=(2,)).
    B, EMB_DIM, CLASS_NUM = 8, 256, 1000

    key = jax.random.PRNGKey(0)
    k_x, k_w, k_b, k_g, k_bt = jax.random.split(key, 5)

    cosine = jax.random.normal(k_x, (B, EMB_DIM), dtype=jnp.float32)
    label = jax.random.randint(k_bt, (B,), 0, CLASS_NUM)  # ignored, like in PyTorch

    # BatchNorm1d params (PyTorch default init: weight=1, bias=0) — perturbed
    # so the affine path is actually exercised.
    gamma = jnp.ones((EMB_DIM,), jnp.float32) + 0.1 * jax.random.normal(k_g, (EMB_DIM,))
    beta = 0.1 * jax.random.normal(k_bt, (EMB_DIM,)).astype(jnp.float32)

    # nn.Linear init bounds, deterministic via PRNGKey(0).
    bound_w = 1.0 / math.sqrt(EMB_DIM)
    weight = jax.random.uniform(k_w, (CLASS_NUM, EMB_DIM), jnp.float32,
                                minval=-bound_w, maxval=bound_w)
    bias = jax.random.uniform(k_b, (CLASS_NUM,), jnp.float32,
                              minval=-bound_w, maxval=bound_w)
    weight_t = weight.T  # (EMB_DIM, CLASS_NUM) for h @ W^T

    out = linear_loss_forward(cosine, label, gamma, beta, weight_t, bias, tile_c=512)
    out = jax.block_until_ready(out)
    assert out.shape == (B, CLASS_NUM), out.shape

    # Tight check against a reference that uses the same bf16 activation/weight path.
    ref_bf16 = _reference_forward(cosine, gamma, beta, weight_t, bias, bf16_path=True)
    err_bf16 = float(jnp.abs(out - ref_bf16).max())
    assert jnp.allclose(out, ref_bf16, atol=2e-2, rtol=2e-2), err_bf16

    # Looser sanity check against the full-f32 reference (bf16 quantization error).
    ref_f32 = _reference_forward(cosine, gamma, beta, weight_t, bias, bf16_path=False)
    err_f32 = float(jnp.abs(out - ref_f32).max())
    assert jnp.allclose(out, ref_f32, atol=1e-1, rtol=1e-1), err_f32

    # Also exercise the auto tile_c (VMEM-aware) path once.
    out_auto = jax.block_until_ready(
        linear_loss_forward(cosine, label, gamma, beta, weight_t, bias))
    assert out_auto.shape == (B, CLASS_NUM)
    assert jnp.allclose(out_auto, ref_bf16, atol=2e-2, rtol=2e-2)

    print("KERNEL_OK")
</pallas_src>

<mosaic_0001>
module attributes {stable_mosaic.version = 11 : i64} {
  func.func @_matmul_bias_kernel(%arg0: i32, %arg1: memref<8x256xbf16, #tpu.memory_space<vmem>>, %arg2: memref<1x256x512xbf16, #tpu.memory_space<vmem>>, %arg3: memref<1x512xf32, #tpu.memory_space<vmem>>, %arg4: memref<8x512xf32, #tpu.memory_space<vmem>>) attributes {dimension_semantics = [#tpu.dimension_semantics<parallel>], iteration_bounds = array<i64: 2>, scalar_prefetch = 0 : i64, scratch_operands = 0 : i64, tpu.core_type = #tpu.core_type<tc>, window_params = [{pipeline_mode = #tpu.pipeline_mode<synchronous>, transform_indices = @transform_0, window_bounds = array<i64: 8, 256>}, {transform_indices = @transform_1, window_bounds = array<i64: 1, 256, 512>}, {transform_indices = @transform_2, window_bounds = array<i64: 1, 512>}, {transform_indices = @transform_3, window_bounds = array<i64: 8, 512>}]} {
    %c0 = arith.constant 0 : index
    %c0_0 = arith.constant 0 : index
    %0 = vector.load %arg1[%c0, %c0_0] : memref<8x256xbf16, #tpu.memory_space<vmem>>, vector<8x256xbf16>
    %c0_1 = arith.constant 0 : index
    %c0_2 = arith.constant 0 : index
    %c0_3 = arith.constant 0 : index
    %1 = vector.load %arg2[%c0_1, %c0_2, %c0_3] : memref<1x256x512xbf16, #tpu.memory_space<vmem>>, vector<1x256x512xbf16>
    %2 = vector.shape_cast %1 : vector<1x256x512xbf16> to vector<256x512xbf16>
    %cst = arith.constant dense<0.000000e+00> : vector<8x512xf32>
    %3 = tpu.matmul %0, %2, %cst {dimension_numbers = #tpu.dot_dimension_numbers<[1], [0], [0], [1], [0, 0, 1, 1], [], []>} : vector<8x256xbf16>, vector<256x512xbf16>, vector<8x512xf32> -> vector<8x512xf32>
    %c0_4 = arith.constant 0 : index
    %c0_5 = arith.constant 0 : index
    %4 = vector.load %arg3[%c0_4, %c0_5] : memref<1x512xf32, #tpu.memory_space<vmem>>, vector<1x512xf32>
    %5 = vector.broadcast %4 : vector<1x512xf32> to vector<8x512xf32>
    %6 = arith.addf %3, %5 : vector<8x512xf32>
    %c0_6 = arith.constant 0 : index
    %c0_7 = arith.constant 0 : index
    %7 = vector.load %arg4[%c0_6, %c0_7] : memref<8x512xf32, #tpu.memory_space<vmem>>, vector<8x512xf32>
    tpu.vector_store %arg4[%c0_6, %c0_7], %6 {strides = array<i32>} : memref<8x512xf32, #tpu.memory_space<vmem>>, vector<8x512xf32>,
    return
  }
  func.func @transform_0(%arg0: i32) -> (i32, i32) {
    %c0_i32 = arith.constant 0 : i32
    %c0_i32_0 = arith.constant 0 : i32
    %c0_i32_1 = arith.constant 0 : i32
    return %c0_i32, %c0_i32_0 : i32, i32
  }
  func.func @transform_1(%arg0: i32) -> (i32, i32, i32) {
    %c0_i32 = arith.constant 0 : i32
    %c0_i32_0 = arith.constant 0 : i32
    %c0_i32_1 = arith.constant 0 : i32
    return %arg0, %c0_i32, %c0_i32_0 : i32, i32, i32
  }
  func.func @transform_2(%arg0: i32) -> (i32, i32) {
    %c0_i32 = arith.constant 0 : i32
    %c0_i32_0 = arith.constant 0 : i32
    return %c0_i32, %arg0 : i32, i32
  }
  func.func @transform_3(%arg0: i32) -> (i32, i32) {
    %c0_i32 = arith.constant 0 : i32
    %c0_i32_0 = arith.constant 0 : i32
    return %c0_i32, %arg0 : i32, i32
  }
}

</mosaic_0001>

<bundles_post_ra>
// kernel: tpu_custom_call.1
= control target key start
LH: loop header
LB: loop body
LE: loop exit
PB: predicated region body
PF: predicated region fallthrough
CT: control target
= control target key end

     0   :  { %8 = vsyncpa [#allocation3], 0  ;;  %s1595_s0 = inlined_call_operand.hbm [shape: bf16[8,256], index: 0, kind: input, shape index: {}]   ;;  %s1596_s1 = inlined_call_operand.hbm [shape: bf16[2,256,512], index: 1, kind: input, shape index: {}]   ;;  %s1597_s2 = inlined_call_operand.hbm [shape: f32[1,1024], index: 2, kind: input, shape index: {}]   ;;  %s1598_s3 = inlined_call_operand.hbm [shape: f32[8,1024], index: 3, kind: output, shape index: {}]  }
   0x1   :  { %9 = vsyncpa [#allocation6], 0 }
   0x2   :  { %11 = vsyncpa [#allocation6 + $0x1], 0 }
   0x3   :  { %12 = vsyncpa [#allocation4], 0 }
   0x4   :  { %14 = vsyncpa [#allocation4 + $0x1], 0  ;;  %s1293_s12 = smov 0   ;;  %s1295_s13 = smov 0  }
   0x5   :  { %s1297_s14 = smov 0   ;;  %s1299_s15 = smov 0  }
   0x6 LB: > { %s1314_s16 = sadd.s32 1, %s1265_s15   ;;  %s48_s17 = sadd.s32 1, %s1261_s14  ;;  %s1265_s15 = sphi %s1299_s15, %s1621_s15   ;;  %s1261_s14 = sphi %s1297_s14, %s1620_s14   ;;  %s1257_s13 = sphi %s1295_s13, %s1619_s13   ;;  %s1253_s12 = sphi %s1293_s12, %s1618_s12  }
   0x7   : > { %s45_s18 = ssub.s32 %s1265_s15, %s1314_s16  ;;  %p55_p0 = scmp.ne.s32.totalorder %s1261_s14, %s1257_s13 }
   0x8   : > { %p46_p1 = scmp.eq.s32.totalorder %s45_s18, 0  ;;  %p56_p2 = scmp.eq.s32.totalorder %s1265_s15, 0 }
   0x9   : > { %p971_p4 = scmp.lt.s32.totalorder %s1265_s15, 2  ;;  %s148_s20 = sand.u32 1, %s1265_s15  }
   0xa   : > { %s1325_s19 = scalar_select %p46_p1, %s1261_s14, %s48_s17  }
   0xb   : > { %p57_p5 = por %p56_p2, %p55_p0  ;;  %s150_s21 = sand.u32 1, %s1261_s14  }
   0xc   : > { %s860_s22 = sshll.u32 %s150_s21, 9  ;;  %s942_s23 = sshll.u32 %s1265_s15, 13 }
   0xd   : > { %s1338_s26 = scalar_lea.hbm %s1596_s1, %s942_s23  ;;  %s152_s27 = scalar_lea.vmem [#allocation5], %s860_s22 }
   0xe   : > { %s159_s28 = sshll.u32 %s152_s27, 4  ;;  %p1340_p6 = pnand %p971_p4, %p57_p5  ;;  %s1344_s28 = int_to_ptr.vmem [resolvable:$true] %s159_s28 }
   0xf   : > { %s1346_s30 = scalar_lea.sflag [#allocation6], %s148_s20  ;;  %s1107_s4 = scalar_lea.hbm %s1338_s26, 8192 }
  0x10   : > { %p1108_p7 = scmp.ne.s32.totalorder %s1338_s26, %s1107_s4  ;;  %p1109_p8 = pneg %p1340_p6 }
  0x11   : > { %s1112_s7 = scalar_lea.hbm %s1596_s1, 16384  ;;  %p1113_p11 = scmp.lt.u32.totalorder %s1338_s26, %s1596_s1 }
  0x12   : > { %p1110_p9 = pnand %p1109_p8, %p1108_p7  ;;  %p1114_p12 = scmp.lt.u32.totalorder %s1112_s7, %s1107_s4 }
  0x13   : > { %p1116_p1 = scmp.lt.u32.totalorder %s1107_s4, %s1338_s26 }
  0x14   : > { %p1111_p10 = pneg %p1110_p9  ;;  %p1115_p13 = por %p1114_p12, %p1113_p11 }
  0x16   : > { %p1117_p2 = por %p1116_p1, %p1115_p13 }
  0x18   : > { %p1118_p4 = pnand %p1117_p2, %p1111_p10 }
  0x1a   : > { %1121 = shalt.err (!%p1118_p4)
}
  0x1b   : > { %s1122_s10 = scalar_lea.vmem %s1344_s28, 8192  ;;  %s1267_s11 = smov [#allocation5]  }
  0x1c   : > { %p1123_p5 = scmp.ne.s32.totalorder %s1344_s28, %s1122_s10  ;;  %s1127_s17 = sshll.u32 %s1267_s11, 4  ;;  %s1128_s17 = int_to_ptr.vmem [resolvable:$false] %s1127_s17 }
  0x1d   : > { %s1129_s18 = scalar_lea.vmem %s1128_s17, 16384  ;;  %p1130_p3 = scmp.lt.s32.totalorder %s1344_s28, %s1128_s17 }
  0x1e   : > { %p1125_p7 = pnand %p1123_p5, %p1109_p8  ;;  %p1131_p11 = scmp.lt.s32.totalorder %s1129_s18, %s1122_s10 }
  0x20   : > { %p1126_p9 = pneg %p1125_p7  ;;  %p1132_p12 = por %p1131_p11, %p1130_p3 }
  0x22   : > { %p1133_p13 = pnand %p1132_p12, %p1126_p9 }
  0x24   : > { %1136 = shalt.err (!%p1133_p13)
}
  0x25   : > { %s1268_s20 = smov 256   ;;  %s1269_s22 = smov 16  }
  0x26   : > { %962 = dma.hbm_to_vmem [thread:$0]  (!%p1340_p6), %s1338_s26, 8192, %s1344_s28, %s1346_s30, %s1268_s20, %s1268_s20, %s1269_s22  }
  0x27   : > { %s1375_s23 = sadd.s32 4294967295, %s1265_s15   ;;  %s856_s24 = sadd.s32 4294967294, %s1265_s15  }
  0x28   : > { %p61_p3 = scmp.ne.s32.totalorder %s1257_s13, %s1253_s12  ;;  %p1599_p10 = scmp.eq.s32.totalorder %s1375_s23, 0 }
  0x29   : > { %p111_p1 = scmp.eq.s32.totalorder %s1375_s23, 1  ;;  %p117_p2 = scmp.eq.s32.totalorder %s856_s24, 1 }
  0x2a   : > { %p1384_p4 = por %p1599_p10, %p61_p3  ;;  %p857_p5 = scmp.ge.s32.totalorder %s1265_s15, 1 }
  0x2b   : > { %p1392_p7 = por %p111_p1, %p55_p0  ;;  %p1396_p9 = por %p117_p2, %p61_p3 }
  0x2c   : > { %s1605_s25 = scalar_select %p1384_p4, 1, 0 }
  0x2d   : > { %s1606_s26 = scalar_select %p1392_p7, 1, 0 }
  0x2e   : > { %s1607_s27 = scalar_select %p1396_p9, 1, 0 }
  0x2f   : > { %p124_p11 = scmp.lt.s32.totalorder %s1265_s15, 3  ;;  %s863_s28 = sshll.u32 %s150_s21, 2 }
  0x30   : > { %s1270_s5 = smov [#allocation2]   ;;  %s943_s7 = sshll.u32 %s1265_s15, 6 }
  0x31   : > { %p1403_p12 = pnand %p857_p5, %p124_p11  ;;  %s137_s6 = sshll.u32 %s1270_s5, 4  ;;  %s1407_s6 = int_to_ptr.vmem [resolvable:$true] %s137_s6 }
  0x32   : > { %s1415_s10 = scalar_lea.hbm %s1597_s2, %s943_s7  ;;  %s173_s21 = scalar_lea.vmem [#allocation7], %s863_s28 }
  0x33   : > { %s1608_s4 = scalar_select %p1403_p12, 1, 0 }
  0x34   : > { %p955_p0 = pneg %p1403_p12  ;;  %s181_s11 = sshll.u32 %s173_s21, 4  ;;  %s182_s11 = int_to_ptr.vmem [resolvable:$true] %s181_s11 }
  0x35   : > { %s1137_s18 = scalar_lea.hbm %s1415_s10, 64  ;;  %s1142_s24 = scalar_lea.hbm %s1597_s2, 128 }
  0x36   : > { %p1419_p13 = pnand %p955_p0, %p1599_p10  ;;  %p1138_p3 = scmp.ne.s32.totalorder %s1415_s10, %s1137_s18 }
  0x37   : > { %p1143_p5 = scmp.lt.u32.totalorder %s1415_s10, %s1597_s2  ;;  %p1144_p11 = scmp.lt.u32.totalorder %s1142_s24, %s1137_s18 }
  0x38   : > { %s1609_s17 = scalar_select %p1419_p13, 1, 0 }
  0x39   : > { %p1140_p1 = pnand %p1138_p3, %p1109_p8  ;;  %p1145_p0 = por %p1144_p11, %p1143_p5 }
  0x3a   : > { %p1146_p10 = scmp.lt.u32.totalorder %s1137_s18, %s1415_s10 }
  0x3b   : > { %p1141_p2 = pneg %p1140_p1 }
  0x3c   : > { %p1147_p9 = por %p1146_p10, %p1145_p0 }
  0x3e   : > { %p1148_p7 = pnand %p1147_p9, %p1141_p2 }
  0x40   : > { %1151 = shalt.err (!%p1148_p7)
}
  0x41   : > { %s1152_s28 = scalar_lea.vmem %s182_s11, 64  ;;  %s1271_s8 = smov [#allocation7]  }
  0x42   : > { %p1153_p4 = scmp.ne.s32.totalorder %s182_s11, %s1152_s28  ;;  %s1157_s9 = sshll.u32 %s1271_s8, 4  ;;  %s1158_s9 = int_to_ptr.vmem [resolvable:$false] %s1157_s9 }
  0x43   : > { %s1159_s21 = scalar_lea.vmem %s1158_s9, 128  ;;  %p1160_p12 = scmp.lt.s32.totalorder %s182_s11, %s1158_s9 }
  0x44   : > { %p1155_p3 = pnand %p1153_p4, %p1109_p8  ;;  %p1161_p13 = scmp.lt.s32.totalorder %s1159_s21, %s1152_s28 }
  0x46   : > { %p1156_p1 = pneg %p1155_p3  ;;  %p1162_p5 = por %p1161_p13, %p1160_p12 }
  0x48   : > { %p1163_p11 = pnand %p1162_p5, %p1156_p1 }
  0x4a   : > { %1166 = shalt.err (!%p1163_p11)
}
  0x4b   : > { %965 = dma.hbm_to_vmem [thread:$0]  (!%p1340_p6), %s1415_s10, 64, %s182_s11, %s1346_s30  }
  0x4c   : > { %s1167_s22 = scalar_lea.hbm %s1595_s0, 128  ;;  %p1610_p10 = scmp.ne.s32.totalorder %s1609_s17, 0 }
  0x4d   : > { %p1168_p8 = scmp.ne.s32.totalorder %s1595_s0, %s1167_s22  ;;  %p1174_p12 = scmp.lt.u32.totalorder %s1167_s22, %s1595_s0 }
  0x4e   : > { %p1169_p4 = pneg %p1610_p10 }
  0x50   : > { %p1170_p7 = pnand %p1169_p4, %p1168_p8 }
  0x52   : > { %p1171_p9 = pneg %p1170_p7 }
  0x54   : > { %p1176_p13 = pnand %p1174_p12, %p1171_p9 }
  0x56   : > { %1179 = shalt.err (!%p1176_p13)
}
  0x57   : > { %s1180_s29 = scalar_lea.vmem %s1407_s6, 128  ;;  %p1188_p3 = scmp.lt.s32.totalorder %s1407_s6, %s1407_s6 }
  0x58   : > { %p1181_p6 = scmp.ne.s32.totalorder %s1407_s6, %s1180_s29  ;;  %p1189_p1 = scmp.lt.s32.totalorder %s1180_s29, %s1180_s29 }
  0x5a   : > { %p1183_p2 = pnand %p1181_p6, %p1169_p4  ;;  %p1190_p5 = por %p1189_p1, %p1188_p3 }
  0x5c   : > { %p1184_p0 = pneg %p1183_p2 }
  0x5e   : > { %p1191_p11 = pnand %p1190_p5, %p1184_p0 }
  0x60   : > { %1194 = shalt.err (!%p1191_p11)
}
  0x61   : > { %958 = dma.hbm_to_vmem [thread:$0]  (!%p1610_p10), %s1595_s0, 128, %s1407_s6, [#allocation3]  }
  0x62   : > { %p1611_p8 = scmp.ne.s32.totalorder %s1608_s4, 0 }
  0x63   : > { %p1612_p7 = scmp.eq.s32.totalorder (!%p1611_p8), %s1375_s23, 0 }
  0x64   : > { %190 = sbr.rel (%p1611_p8) target bundleno = 407 (0x197), region = 32 }
  0x6b   : > { %1240 = dma.done.wait (%p1612_p7), [#allocation3], 128   ;;  %p1613_p4 = pmov %p1612_p7 }
  0x6c   : > { %s196_s11 = sand.u32 1, %s1375_s23   ;;  %s1472_s8 = sand.u32 1, %s1257_s13  }
  0x6d   : > { %1242 = vsyncadd (%p1613_p4), [#allocation3], 4294967168  ;;  %s868_s17 = sshll.u32 %s1472_s8, 9  ;;  %s197_s9 = scalar_lea.sflag [#allocation6], %s196_s11 }
  0x6e   : > { %s1475_s21 = scalar_lea.vmem [#allocation5], %s868_s17  ;;  %p1614_p10 = scmp.ne.s32.totalorder %s1605_s25, 0 }
  0x70   : > { %1244 = dma.done.wait (%p1614_p10), %s197_s9, 8256  }
  0x71   : > { %1246 = vsyncadd (%p1614_p10), %s197_s9, 4294959040  ;;  %v1009_v0 = vld [vmem:[%s1475_s21 + $0x4] ss:$16 sps:$4 sm:$0xff]   ;;  %v1011_v1 = vld [vmem:[%s1475_s21 + $0xc] ss:$16 sps:$4 sm:$0xff]   ;;  %s869_s25 = sshll.u32 %s1472_s8, 2 }
  0x72   : > { %653 = vmatprep.subr.bf16.mxu0 %v1009_v0  ;;  %v1013_v2 = vld [vmem:[%s1475_s21] ss:$16 sps:$4 sm:$0xff]   ;;  %v1014_v3 = vld [vmem:[%s1475_s21 + $0x8] ss:$16 sps:$4 sm:$0xff]   ;;  %694 = vmatprep.subr.bf16.mxu1 %v1011_v1  ;;  %v1015_v4 = vld [vmem:[%s1475_s21 + $0x24] ss:$16 sps:$4 sm:$0xff]  }
  0x73   : > { %654 = vmatpush1.bf16.msra.mxu0 %v1013_v2  ;;  %695 = vmatpush1.bf16.msra.mxu1 %v1014_v3  ;;  %v1017_v5 = vld [vmem:[%s1475_s21 + $0x2c] ss:$16 sps:$4 sm:$0xff]   ;;  %v1019_v6 = vld [vmem:[%s1475_s21 + $0x20] ss:$16 sps:$4 sm:$0xff]   ;;  %v1020_v7 = vld [vmem:[%s1475_s21 + $0x28] ss:$16 sps:$4 sm:$0xff]   ;;  %v306_v3 = vlaneseq }
  0x74   : > { %655 = vmatprep.subr.bf16.mxu0 %v1015_v4  ;;  %696 = vmatprep.subr.bf16.mxu1 %v1017_v5  ;;  %v1021_v8 = vld [vmem:[%s1475_s21 + $0x44] ss:$16 sps:$4 sm:$0xff]   ;;  %v1023_v9 = vld [vmem:[%s1475_s21 + $0x4c] ss:$16 sps:$4 sm:$0xff]   ;;  %v1025_v10 = vld [vmem:[%s1475_s21 + $0x40] ss:$16 sps:$4 sm:$0xff]  }
  0x75   : > { %v1026_v11 = vld [vmem:[%s1475_s21 + $0x48] ss:$16 sps:$4 sm:$0xff]   ;;  %v1027_v12 = vld [vmem:[%s1475_s21 + $0x64] ss:$16 sps:$4 sm:$0xff]   ;;  %v1029_v13 = vld [vmem:[%s1475_s21 + $0x6c] ss:$16 sps:$4 sm:$0xff]  }
  0x76   : > { %v1031_v14 = vld [vmem:[%s1475_s21 + $0x60] ss:$16 sps:$4 sm:$0xff]   ;;  %v1032_v15 = vld [vmem:[%s1475_s21 + $0x68] ss:$16 sps:$4 sm:$0xff]   ;;  %v1033_v16 = vld [vmem:[%s1475_s21 + $0x84] ss:$16 sps:$4 sm:$0xff]  }
  0x77   : > { %656 = vmatpush1.bf16.msra.mxu0 %v1019_v6  ;;  %697 = vmatpush1.bf16.msra.mxu1 %v1020_v7  ;;  %v1035_v17 = vld [vmem:[%s1475_s21 + $0x8c] ss:$16 sps:$4 sm:$0xff]   ;;  %v1037_v18 = vld [vmem:[%s1475_s21 + $0x80] ss:$16 sps:$4 sm:$0xff]   ;;  %v1038_v19 = vld [vmem:[%s1475_s21 + $0x88] ss:$16 sps:$4 sm:$0xff]  }
  0x78   : > { %657 = vmatprep.subr.bf16.mxu0 %v1021_v8  ;;  %698 = vmatprep.subr.bf16.mxu1 %v1023_v9  ;;  %v1039_v20 = vld [vmem:[%s1475_s21 + $0xa4] ss:$16 sps:$4 sm:$0xff]   ;;  %v1041_v21 = vld [vmem:[%s1475_s21 + $0xac] ss:$16 sps:$4 sm:$0xff]   ;;  %v1043_v22 = vld [vmem:[%s1475_s21 + $0xa0] ss:$16 sps:$4 sm:$0xff]  }
  0x79   : > { %v1044_v23 = vld [vmem:[%s1475_s21 + $0xa8] ss:$16 sps:$4 sm:$0xff]   ;;  %v1045_v24 = vld [vmem:[%s1475_s21 + $0xc4] ss:$16 sps:$4 sm:$0xff]   ;;  %v1047_v25 = vld [vmem:[%s1475_s21 + $0xcc] ss:$16 sps:$4 sm:$0xff]  }
  0x7a   : > { %v1049_v26 = vld [vmem:[%s1475_s21 + $0xc0] ss:$16 sps:$4 sm:$0xff]   ;;  %v1050_v27 = vld [vmem:[%s1475_s21 + $0xc8] ss:$16 sps:$4 sm:$0xff]   ;;  %v1051_v28 = vld [vmem:[%s1475_s21 + $0xe4] ss:$16 sps:$4 sm:$0xff]  }
  0x7b   : > { %658 = vmatpush1.bf16.msra.mxu0 %v1025_v10  ;;  %699 = vmatpush1.bf16.msra.mxu1 %v1026_v11  ;;  %v1053_v29 = vld [vmem:[%s1475_s21 + $0xec] ss:$16 sps:$4 sm:$0xff]   ;;  %v1055_v30 = vld [vmem:[%s1475_s21 + $0xe0] ss:$16 sps:$4 sm:$0xff]   ;;  %v1056_v31 = vld [vmem:[%s1475_s21 + $0xe8] ss:$16 sps:$4 sm:$0xff]  }
  0x7c   : > { %659 = vmatprep.subr.bf16.mxu0 %v1027_v12  ;;  %700 = vmatprep.subr.bf16.mxu1 %v1029_v13  ;;  %v1057_v32 = vld [vmem:[%s1475_s21 + $0x104] ss:$16 sps:$4 sm:$0xff]   ;;  %v1059_v33 = vld [vmem:[%s1475_s21 + $0x10c] ss:$16 sps:$4 sm:$0xff]   ;;  %v1061_v34 = vld [vmem:[%s1475_s21 + $0x100] ss:$16 sps:$4 sm:$0xff]  }
  0x7d   : > { %v1062_v35 = vld [vmem:[%s1475_s21 + $0x108] ss:$16 sps:$4 sm:$0xff]   ;;  %v1063_v36 = vld [vmem:[%s1475_s21 + $0x124] ss:$16 sps:$4 sm:$0xff]   ;;  %v1065_v37 = vld [vmem:[%s1475_s21 + $0x12c] ss:$16 sps:$4 sm:$0xff]  }
  0x7e   : > { %v1067_v38 = vld [vmem:[%s1475_s21 + $0x120] ss:$16 sps:$4 sm:$0xff]   ;;  %v1068_v39 = vld [vmem:[%s1475_s21 + $0x128] ss:$16 sps:$4 sm:$0xff]   ;;  %v1069_v40 = vld [vmem:[%s1475_s21 + $0x144] ss:$16 sps:$4 sm:$0xff]  }
  0x7f   : > { %660 = vmatpush1.bf16.msra.mxu0 %v1031_v14  ;;  %701 = vmatpush1.bf16.msra.mxu1 %v1032_v15  ;;  %v1071_v41 = vld [vmem:[%s1475_s21 + $0x14c] ss:$16 sps:$4 sm:$0xff]   ;;  %v1073_v42 = vld [vmem:[%s1475_s21 + $0x140] ss:$16 sps:$4 sm:$0xff]   ;;  %v1074_v43 = vld [vmem:[%s1475_s21 + $0x148] ss:$16 sps:$4 sm:$0xff]  }
  0x80   : > { %661 = vmatprep.subr.bf16.mxu0 %v1033_v16  ;;  %702 = vmatprep.subr.bf16.mxu1 %v1035_v17  ;;  %v1075_v44 = vld [vmem:[%s1475_s21 + $0x164] ss:$16 sps:$4 sm:$0xff]   ;;  %v1077_v45 = vld [vmem:[%s1475_s21 + $0x16c] ss:$16 sps:$4 sm:$0xff]   ;;  %v1079_v48 = vld [vmem:[%s1475_s21 + $0x160] ss:$16 sps:$4 sm:$0xff]  }
  0x81   : > { %v239_v46 = vld [vmem:[#allocation2] sm:$0xff]  ;;  %v1081_v50 = vld [vmem:[%s1475_s21 + $0x184] ss:$16 sps:$4 sm:$0xff]   ;;  %v1085_v52 = vld [vmem:[%s1475_s21 + $0x180] ss:$16 sps:$4 sm:$0xff]   ;;  %v307_v4 = vshrl.u32 %v306_v3, 7 }
  0x82   : > { %v872_v47 = vcombine.high %v239_v46, %v239_v46  ;;  %v1080_v49 = vld [vmem:[%s1475_s21 + $0x168] ss:$16 sps:$4 sm:$0xff]   ;;  %v1083_v51 = vld [vmem:[%s1475_s21 + $0x18c] ss:$16 sps:$4 sm:$0xff]   ;;  %v1087_v54 = vld [vmem:[%s1475_s21 + $0x1a4] ss:$16 sps:$4 sm:$0xff]   ;;  %v871_v2 = vcombine.low %v239_v46, %v239_v46 }
  0x83   : > { %662 = vmatpush1.bf16.msra.mxu0 %v1037_v18  ;;  %703 = vmatpush1.bf16.msra.mxu1 %v1038_v19  ;;  %v1086_v53 = vld [vmem:[%s1475_s21 + $0x188] ss:$16 sps:$4 sm:$0xff]   ;;  %v1089_v55 = vld [vmem:[%s1475_s21 + $0x1ac] ss:$16 sps:$4 sm:$0xff]   ;;  %v1091_v56 = vld [vmem:[%s1475_s21 + $0x1a0] ss:$16 sps:$4 sm:$0xff]  }
  0x84   : > { %663 = vmatprep.subr.bf16.mxu0 %v1039_v20  ;;  %704 = vmatprep.subr.bf16.mxu1 %v1041_v21  ;;  %v1092_v57 = vld [vmem:[%s1475_s21 + $0x1a8] ss:$16 sps:$4 sm:$0xff]   ;;  %v1093_v58 = vld [vmem:[%s1475_s21 + $0x1c4] ss:$16 sps:$4 sm:$0xff]   ;;  %v1095_v59 = vld [vmem:[%s1475_s21 + $0x1cc] ss:$16 sps:$4 sm:$0xff]  }
  0x85   : > { %685 = vmatprep.mubr.bf16.mxu0 %v872_v47  ;;  %726 = vmatprep.mubr.bf16.mxu1 %v872_v47  ;;  %v1097_v60 = vld [vmem:[%s1475_s21 + $0x1c0] ss:$16 sps:$4 sm:$0xff]   ;;  %v1098_v61 = vld [vmem:[%s1475_s21 + $0x1c8] ss:$16 sps:$4 sm:$0xff]   ;;  %v1099_v62 = vld [vmem:[%s1475_s21 + $0x1e4] ss:$16 sps:$4 sm:$0xff]  }
  0x86   : > { %v1101_v63 = vld [vmem:[%s1475_s21 + $0x1ec] ss:$16 sps:$4 sm:$0xff]   ;;  %v1103_v0 = vld [vmem:[%s1475_s21 + $0x1e0] ss:$16 sps:$4 sm:$0xff]   ;;  %v1104_v1 = vld [vmem:[%s1475_s21 + $0x1e8] ss:$16 sps:$4 sm:$0xff]  }
  0x87   : > { %664 = vmatpush1.bf16.msra.mxu0 %v1043_v22  ;;  %705 = vmatpush1.bf16.msra.mxu1 %v1044_v23  ;;  %s870_s4 = sshll.u32 %s1472_s8, 5  ;;  %v308_v5 = vsub.s32 0, %v307_v4  ;;  %v316_v6 = vsub.s32 2, %v307_v4  ;;  %s209_s6 = scalar_lea.vmem [#allocation7], %s869_s25  ;;  %v312_v8 = vsub.s32 1, %v307_v4  ;;  %v320_v9 = vsub.s32 3, %v307_v4 }
  0x88   : > { %665 = vmatprep.subr.bf16.mxu0 %v1045_v24  ;;  %706 = vmatprep.subr.bf16.mxu1 %v1047_v25  ;;  %v304_v7 = vld [vmem:[%s209_s6] sm:$0xf]  ;;  %s944_s18 = sshll.u32 %s1375_s23, 9  ;;  %s236_s20 = scalar_lea.vmem [#allocation8], %s870_s4 }
  0x89   : > { %v309_v10 = vrot.slane %v304_v7, %v308_v5  ;;  %v317_v11 = vrot.slane %v304_v7, %v316_v6  ;;  %v313_v12 = vrot.slane %v304_v7, %v312_v8  ;;  %v321_v13 = vrot.slane %v304_v7, %v320_v9  ;;  %s754_s22 = sshll.u32 %s236_s20, 4  ;;  %s1551_s7 = scalar_lea.hbm %s1598_s3, %s944_s18  ;;  %s1553_s22 = int_to_ptr.vmem [resolvable:$true] %s754_s22 }
  0x8a   : > { %s740_s23 = scalar_lea.sflag [#allocation4], %s1472_s8  ;;  %s1195_s28 = scalar_lea.vmem %s1553_s22, 512 }
  0x8b   : > { %666 = vmatpush1.bf16.msra.mxu0 %v1049_v26  ;;  %707 = vmatpush1.bf16.msra.mxu1 %v1050_v27  ;;  %p1196_p9 = scmp.ne.s32.totalorder %s1553_s22, %s1195_s28  ;;  %p1615_p12 = scmp.ne.s32.totalorder %s1606_s26, 0 }
  0x8c   : > { %667 = vmatprep.subr.bf16.mxu0 %v1051_v28  ;;  %708 = vmatprep.subr.bf16.mxu1 %v1053_v29  ;;  %s1272_s29 = smov [#allocation8]  }
  0x8d   : > { %p1197_p13 = pnand %p1196_p9, %p1615_p12  ;;  %s1199_s30 = sshll.u32 %s1272_s29, 4  ;;  %s1200_s30 = int_to_ptr.vmem [resolvable:$false] %s1199_s30 }
  0x8e   : > { %s1201_s10 = scalar_lea.vmem %s1200_s30, 1024  ;;  %p1202_p2 = scmp.lt.s32.totalorder %s1553_s22, %s1200_s30 }
  0x8f   : > { %668 = vmatpush1.bf16.msra.mxu0 %v1055_v30  ;;  %709 = vmatpush1.bf16.msra.mxu1 %v1056_v31  ;;  %p1198_p6 = pneg %p1197_p13  ;;  %p1203_p0 = scmp.lt.s32.totalorder %s1201_s10, %s1195_s28 }
  0x90   : > { %669 = vmatprep.subr.bf16.mxu0 %v1057_v32  ;;  %710 = vmatprep.subr.bf16.mxu1 %v1059_v33 }
  0x91   : > { %p1204_p3 = por %p1203_p0, %p1202_p2 }
  0x93   : > { %670 = vmatpush1.bf16.msra.mxu0 %v1061_v34  ;;  %711 = vmatpush1.bf16.msra.mxu1 %v1062_v35  ;;  %p1205_p1 = pnand %p1204_p3, %p1198_p6 }
  0x94   : > { %671 = vmatprep.subr.bf16.mxu0 %v1063_v36  ;;  %712 = vmatprep.subr.bf16.mxu1 %v1065_v37 }
  0x97   : > { %672 = vmatpush1.bf16.msra.mxu0 %v1067_v38  ;;  %713 = vmatpush1.bf16.msra.mxu1 %v1068_v39 }
  0x98   : > { %673 = vmatprep.subr.bf16.mxu0 %v1069_v40  ;;  %714 = vmatprep.subr.bf16.mxu1 %v1071_v41 }
  0x9b   : > { %674 = vmatpush1.bf16.msra.mxu0 %v1073_v42  ;;  %715 = vmatpush1.bf16.msra.mxu1 %v1074_v43 }
  0x9c   : > { %675 = vmatprep.subr.bf16.mxu0 %v1075_v44  ;;  %716 = vmatprep.subr.bf16.mxu1 %v1077_v45 }
  0x9f   : > { %676 = vmatpush1.bf16.msra.mxu0 %v1079_v48  ;;  %717 = vmatpush1.bf16.msra.mxu1 %v1080_v49 }
  0xa0   : > { %677 = vmatprep.subr.bf16.mxu0 %v1081_v50  ;;  %718 = vmatprep.subr.bf16.mxu1 %v1083_v51 }
  0xa3   : > { %678 = vmatpush1.bf16.msra.mxu0 %v1085_v52  ;;  %719 = vmatpush1.bf16.msra.mxu1 %v1086_v53 }
  0xa4   : > { %679 = vmatprep.subr.bf16.mxu0 %v1087_v54  ;;  %720 = vmatprep.subr.bf16.mxu1 %v1089_v55 }
  0xa7   : > { %680 = vmatpush1.bf16.msra.mxu0 %v1091_v56  ;;  %721 = vmatpush1.bf16.msra.mxu1 %v1092_v57 }
  0xa8   : > { %681 = vmatprep.subr.bf16.mxu0 %v1093_v58  ;;  %722 = vmatprep.subr.bf16.mxu1 %v1095_v59 }
  0xab   : > { %682 = vmatpush1.bf16.msra.mxu0 %v1097_v60  ;;  %723 = vmatpush1.bf16.msra.mxu1 %v1098_v61 }
  0xac   : > { %683 = vmatprep.subr.bf16.mxu0 %v1099_v62  ;;  %724 = vmatprep.subr.bf16.mxu1 %v1101_v63 }
  0xaf   : > { %684 = vmatpush1.bf16.msra.mxu0 %v1103_v0  ;;  %725 = vmatpush1.bf16.msra.mxu1 %v1104_v1 }
  0xb2   : > { %686 = vmatmul.mubr.bf16.vlgmr.msra.gmra.mrb[0].mxu0 %v871_v2  ;;  %727 = vmatmul.mubr.bf16.vlgmr.msra.gmra.mrb[0].mxu1 %v871_v2 }
 0x185   : > { %v687_v14 = vpop.f32.mrb[0].mxu0  ;;  %v728_v15 = vpop.f32.mrb[0].mxu1 }
 0x186   : > { %v688_v16 = vadd.f32 %v687_v14, %v309_v10  ;;  %v729_v17 = vadd.f32 %v728_v15, %v317_v11  ;;  %v689_v18 = vpop.f32.mrb[1].mxu0  ;;  %v730_v19 = vpop.f32.mrb[1].mxu1 }
 0x187   : > { %v690_v20 = vadd.f32 %v689_v18, %v313_v12  ;;  %v731_v21 = vadd.f32 %v730_v19, %v321_v13  ;;  %v691_v22 = vpop.f32.mrb[2].mxu0  ;;  %v732_v23 = vpop.f32.mrb[2].mxu1 }
 0x188   : > { %735 = vst [vmem:[%s236_s20] sm:$0xff] %v688_v16  ;;  %737 = vst [vmem:[%s236_s20 + $0x10] sm:$0xff] %v729_v17  ;;  %v692_v24 = vpop.f32.mrb[3].mxu0  ;;  %v733_v25 = vpop.f32.mrb[3].mxu1 }
 0x189   : > { %736 = vst [vmem:[%s236_s20 + $0x8] sm:$0xff] %v690_v20  ;;  %738 = vst [vmem:[%s236_s20 + $0x18] sm:$0xff] %v731_v21 }
 0x18a   : > { %1208 = shalt.err (!%p1205_p1)
}
 0x18b   : > { %s1209_s11 = scalar_lea.hbm %s1551_s7, 512  ;;  %s1213_s9 = scalar_lea.hbm %s1598_s3, 1024 }
 0x18c   : > { %p1210_p5 = scmp.ne.s32.totalorder %s1551_s7, %s1209_s11  ;;  %p1214_p7 = scmp.lt.u32.totalorder %s1551_s7, %s1598_s3 }
 0x18d   : > { %p1215_p4 = scmp.lt.u32.totalorder %s1213_s9, %s1209_s11  ;;  %p1217_p9 = scmp.lt.u32.totalorder %s1209_s11, %s1551_s7 }
 0x18e   : > { %p1211_p11 = pnand %p1210_p5, %p1615_p12 }
 0x18f   : > { %p1216_p10 = por %p1215_p4, %p1214_p7 }
 0x190   : > { %p1212_p8 = pneg %p1211_p11 }
 0x191   : > { %p1218_p13 = por %p1217_p9, %p1216_p10 }
 0x193   : > { %p1219_p6 = pnand %p1218_p13, %p1212_p8 }
 0x195   : > { %1222 = shalt.err (!%p1219_p6)
}
 0x196   : > { %953 = dma.vmem_to_hbm [thread:$0]  (%p1615_p12), %s1553_s22, 512, %s1551_s7, %s740_s23  }
 0x197 PF: > { %s766_s4 = sand.u32 1, %s1253_s12   ;;  %p1616_p2 = scmp.ne.s32.totalorder %s1607_s27, 0 }
 0x198   : > { %p1617_p0 = scmp.ge.s32.totalorder %s1265_s15, 2  ;;  %s767_s6 = scalar_lea.sflag [#allocation4], %s766_s4 }
 0x19a   : > { %p967_p3 = pnand %p1617_p0, %p1616_p2 }
 0x19c   : > { %1248 = dma.done.wait (!%p967_p3), %s767_s6, 512  }
 0x19d   : > { %1250 = vsyncadd (!%p967_p3), %s767_s6, 4294966784  ;;  %p17_p1 = scmp.ge.s32.totalorder %s1314_s16, 4   ;;  %s1618_s12 = smov %s1257_s13 }
 0x19e   : > { %s1619_s13 = smov %s1261_s14  ;;  %s1620_s14 = smov %s1325_s19 }
 0x19f   : > { %s1621_s15 = smov %s1314_s16  ;;  %19 = sbr.rel (!%p17_p1) target bundleno = 6 (0x6), region = 93 }
 0x1a6   :  { %772 = vsyncpa [#allocation3], 1 }
 0x1a7   :  { %774 = vsyncpa [#allocation3 + $0x1], 1 }
 0x1a8   :  { %775 = vsyncpa [#allocation6], 1 }
 0x1a9   :  { %777 = vsyncpa [#allocation6 + $0x1], 1 }
 0x1aa   :  { %778 = vsyncpa [#allocation4], 1 }
 0x1ab   :  { %780 = vsyncpa [#allocation4 + $0x1], 1 }

</bundles_post_ra>
